<compile_context>
chip_gen: v7x
topology: tpu7x:2x2x1
jax: 0.10.0
libtpu: 0.0.40
codegen_flags: <defaults>
</compile_context>

<pallas_src>
import functools

import jax
import jax.numpy as jnp
from jax import lax
from jax.experimental import pallas as pl
from jax.experimental.pallas import tpu as pltpu


def _conv_1x1_kernel(x_ref, w_ref, b1_ref, gamma_ref, beta_ref, col_ref,
                     slope_ref, out_ref, *, H, W, C, P, instance_norm):
    """One batch element, everything in lane-dense (channels, H*W) layout.

    x_ref:    (C, H*W)   f32   flattened NCHW input (conv path + residual)
    w_ref:    (9, P, C)  bf16  tap-major conv weight, tap t = ky*3 + kx
    b1/gamma/beta: (P, 1) f32  per-channel params (lane-broadcast)
    col_ref:  (C, H*W)   i32   column index (i % W) of each flat pixel
    slope_ref:(2,) f32 SMEM    PReLU slopes (ConvLayer's, Conv_1x1's)
    out_ref:  (P, H*W)         channels-first, full-lane output block
    """
    HW = H * W
    x = x_ref[...].astype(jnp.float32)                       # (C, HW)

    # ---- pltpu.roll direction probe: with jnp.roll semantics (elements move
    # toward higher indices) rolling an iota by 1 puts 127 at lane 0. --------
    lane_iota = lax.broadcasted_iota(jnp.int32, (8, 128), 1)
    fwd = (pltpu.roll(lane_iota, shift=1, axis=1)[0:1, 0:1] == 127
           ).astype(jnp.float32)                              # (1, 1)
    bwd = 1.0 - fwd

    def shifted(v, k):
        """(v[i-k], v[i+k]) along the flat H*W lane axis (wrap-around; the
        wrapped entries are overwritten by the reflection selects below)."""
        a = pltpu.roll(v, shift=k, axis=1)
        b = pltpu.roll(v, shift=HW - k, axis=1)
        return fwd * a + bwd * b, fwd * b + bwd * a

    # ---- boundary masks on the flat pixel index ----------------------------
    idx = lax.broadcasted_iota(jnp.int32, (C, HW), 1)
    row0 = idx < W                                            # r == 0
    rowL = idx >= (H - 1) * W                                 # r == H-1
    col = col_ref[...]
    col0 = col == 0                                           # c == 0
    colL = col == W - 1                                       # c == W-1

    # ---- ReflectionPad2d(1), vertical: row variants (ky = 0, 1, 2) ---------
    up_i, dn_i = shifted(x, W)                                # x[r-1,c] / x[r+1,c]
    x_up = jnp.where(row0, dn_i, up_i)                        # row -1 -> row 1
    x_dn = jnp.where(rowL, up_i, dn_i)                        # row H  -> row H-2
    rows = (x_up, x, x_dn)

    # ---- conv_3a: 9 per-tap MXU matmuls, bf16 operands, f32 accumulation ---
    acc = jnp.zeros((P, HW), jnp.float32)
    for ky in range(3):
        base = rows[ky]
        l_i, r_i = shifted(base, 1)                           # [r,c-1] / [r,c+1]
        left = jnp.where(col0, r_i, l_i)                      # col -1 -> col 1
        right = jnp.where(colL, l_i, r_i)                     # col W  -> col W-2
        cols = (left, base, right)                            # kx = 0, 1, 2
        for kx in range(3):
            w_t = w_ref[ky * 3 + kx]                          # (P, C) bf16
            win = cols[kx].astype(jnp.bfloat16)               # (C, HW) bf16
            acc = acc + jnp.dot(w_t, win,
                                preferred_element_type=jnp.float32)

    y = acc + b1_ref[...]                                     # (P, HW) + (P, 1)

    # ---- InstanceNorm2d(affine=True): biased variance, eps=1e-5 ------------
    if instance_norm:
        inv_hw = 1.0 / float(HW)
        mean = jnp.sum(y, axis=-1, keepdims=True) * inv_hw    # (P, 1)
        diff = y - mean
        var = jnp.sum(diff * diff, axis=-1, keepdims=True) * inv_hw
        y = diff * lax.rsqrt(var + 1e-5)
        y = y * gamma_ref[...] + beta_ref[...]

    # ---- PReLU (ConvLayer's) then PReLU (Conv_1x1's) ------------------------
    a1 = slope_ref[0]
    y = jnp.where(y >= 0, y, a1 * y)
    a2 = slope_ref[1]
    y = jnp.where(y >= 0, y, a2 * y)

    # ---- residual add + full-lane store -------------------------------------
    out_ref[...] = (y + x).astype(out_ref.dtype)


def conv_1x1(x_nchw, params, *, instance_norm=True, out_dtype=None,
             vmem_limit_bytes=None):
    """Pallas implementation of Conv_1x1.forward. x_nchw: (N, C, H, W)."""
    w1, b1 = params['w1'], params['b1']
    N, C, H, W = x_nchw.shape
    P = w1.shape[0]
    if P != C:
        raise ValueError("Conv_1x1 residual (out + x) requires planes == in_channels")
    HW = H * W

    # Single channels-first, lane-dense input; free reshape from NCHW; shared
    # by the conv path and the residual add (input read from HBM once).
    x_flat = x_nchw.reshape(N, C, HW).astype(jnp.float32)

    # conv weight (P, C, 3, 3) -> tap-major (9, P, C) bf16 MXU operand.
    w9 = jnp.transpose(w1, (2, 3, 0, 1)).reshape(9, P, C).astype(jnp.bfloat16)
    b1m = jnp.asarray(b1).reshape(P, 1).astype(jnp.float32)
    gm = jnp.asarray(params.get('gamma', jnp.ones((P,), jnp.float32))
                     ).reshape(P, 1).astype(jnp.float32)
    bt = jnp.asarray(params.get('beta', jnp.zeros((P,), jnp.float32))
                     ).reshape(P, 1).astype(jnp.float32)
    slopes = jnp.stack([jnp.asarray(params['a1']).reshape(()),
                        jnp.asarray(params['a2']).reshape(())]
                       ).astype(jnp.float32)                  # (2,) -> SMEM
    col_ids = jnp.asarray(
        jnp.broadcast_to(jnp.tile(jnp.arange(W, dtype=jnp.int32), H), (C, HW)))

    out_dtype = x_nchw.dtype if out_dtype is None else out_dtype
    kernel = functools.partial(_conv_1x1_kernel, H=H, W=W, C=C, P=P,
                               instance_norm=instance_norm)

    out = pl.pallas_call(
        kernel,
        out_shape=jax.ShapeDtypeStruct((N, P, HW), out_dtype),
        grid=(N,),
        in_specs=[
            pl.BlockSpec((None, C, HW), lambda n: (n, 0, 0)),   # x (conv + residual)
            pl.BlockSpec((9, P, C), lambda n: (0, 0, 0)),       # w (tap-major, bf16)
            pl.BlockSpec((P, 1), lambda n: (0, 0)),             # b1
            pl.BlockSpec((P, 1), lambda n: (0, 0)),             # gamma
            pl.BlockSpec((P, 1), lambda n: (0, 0)),             # beta
            pl.BlockSpec((C, HW), lambda n: (0, 0)),            # column index
            pl.BlockSpec(memory_space=pltpu.MemorySpace.SMEM),  # PReLU slopes
        ],
        out_specs=pl.BlockSpec((None, P, HW), lambda n: (n, 0, 0)),
        compiler_params=pltpu.CompilerParams(
            dimension_semantics=("parallel",),
            vmem_limit_bytes=vmem_limit_bytes),
    )(x_flat, w9, b1m, gm, bt, col_ids, slopes)

    # (N, P, H*W) is already channels-first: NCHW is a free reshape.
    return out.reshape(N, P, H, W)


def conv_1x1_ref(x_nchw, params, *, instance_norm=True):
    """Pure-JAX reference (mirrors the PyTorch forward) for verification."""
    w1, b1 = params['w1'], params['b1']
    x = x_nchw.astype(jnp.float32)
    xpad = jnp.pad(x, ((0, 0), (0, 0), (1, 1), (1, 1)), mode='reflect')
    y = lax.conv_general_dilated(
        xpad, w1.astype(jnp.float32), (1, 1), 'VALID',
        dimension_numbers=('NCHW', 'OIHW', 'NCHW'),
        precision=lax.Precision.HIGHEST)
    y = y + b1.reshape(1, -1, 1, 1)
    if instance_norm:
        mean = jnp.mean(y, axis=(2, 3), keepdims=True)
        var = jnp.mean((y - mean) ** 2, axis=(2, 3), keepdims=True)
        y = (y - mean) / jnp.sqrt(var + 1e-5)
        y = y * params['gamma'].reshape(1, -1, 1, 1) + params['beta'].reshape(1, -1, 1, 1)
    a1 = jnp.asarray(params['a1'], jnp.float32)
    y = jnp.where(y >= 0, y, a1 * y)
    a2 = jnp.asarray(params['a2'], jnp.float32)
    y = jnp.where(y >= 0, y, a2 * y)
    return y + x


if __name__ == "__main__":
    N, C, H, W = 2, 4, 16, 16
    P = C          # Conv_1x1's residual (out + x) requires planes == in_channels

    key = jax.random.PRNGKey(0)
    ks = jax.random.split(key, 6)
    params = {
        'w1': 0.2 * jax.random.normal(ks[0], (P, C, 3, 3), jnp.float32),
        'b1': 0.1 * jax.random.normal(ks[1], (P,), jnp.float32),
        'gamma': 1.0 + 0.1 * jax.random.normal(ks[2], (P,), jnp.float32),
        'beta': 0.1 * jax.random.normal(ks[3], (P,), jnp.float32),
        'a1': jnp.float32(0.25),   # PyTorch PReLU default init
        'a2': jnp.float32(0.2),
    }
    x = jax.random.normal(ks[4], (N, C, H, W), jnp.float32)

    for use_in in (True, False):
        out = jax.block_until_ready(conv_1x1(x, params, instance_norm=use_in))
        ref = conv_1x1_ref(x, params, instance_norm=use_in)
        assert out.shape == (N, P, H, W), out.shape
        max_err = float(jnp.max(jnp.abs(out - ref)))
        # bf16 MXU operands (f32 accumulation) vs an f32 reference.
        assert max_err < 3e-2, f"instance_norm={use_in} max_err={max_err}"

    print("KERNEL_OK")
</pallas_src>

<mosaic_0001>
module attributes {stable_mosaic.version = 11 : i64} {
  func.func @_conv_1x1_kernel(%arg0: i32, %arg1: memref<1x4x256xf32, #tpu.memory_space<vmem>>, %arg2: memref<9x4x4xbf16, #tpu.memory_space<vmem>>, %arg3: memref<4x1xf32, #tpu.memory_space<vmem>>, %arg4: memref<4x1xf32, #tpu.memory_space<vmem>>, %arg5: memref<4x1xf32, #tpu.memory_space<vmem>>, %arg6: memref<4x256xi32, #tpu.memory_space<vmem>>, %arg7: memref<2xf32, #tpu.memory_space<smem>>, %arg8: memref<1x4x256xf32, #tpu.memory_space<vmem>>) attributes {dimension_semantics = [#tpu.dimension_semantics<parallel>], iteration_bounds = array<i64: 2>, scalar_prefetch = 0 : i64, scratch_operands = 0 : i64, tpu.core_type = #tpu.core_type<tc>, window_params = [{transform_indices = @transform_0, window_bounds = array<i64: 1, 4, 256>}, {pipeline_mode = #tpu.pipeline_mode<synchronous>, transform_indices = @transform_1, window_bounds = array<i64: 9, 4, 4>}, {pipeline_mode = #tpu.pipeline_mode<synchronous>, transform_indices = @transform_2, window_bounds = array<i64: 4, 1>}, {pipeline_mode = #tpu.pipeline_mode<synchronous>, transform_indices = @transform_3, window_bounds = array<i64: 4, 1>}, {pipeline_mode = #tpu.pipeline_mode<synchronous>, transform_indices = @transform_4, window_bounds = array<i64: 4, 1>}, {pipeline_mode = #tpu.pipeline_mode<synchronous>, transform_indices = @transform_5, window_bounds = array<i64: 4, 256>}, {transform_indices = @transform_6, window_bounds = array<i64: 2>}, {transform_indices = @transform_7, window_bounds = array<i64: 1, 4, 256>}]} {
    %c0 = arith.constant 0 : index
    %c0_0 = arith.constant 0 : index
    %c0_1 = arith.constant 0 : index
    %0 = vector.load %arg1[%c0, %c0_0, %c0_1] : memref<1x4x256xf32, #tpu.memory_space<vmem>>, vector<1x4x256xf32>
    %1 = vector.shape_cast %0 : vector<1x4x256xf32> to vector<4x256xf32>
    %2 = tpu.iota {dimensions = array<i32: 1>} : vector<8x128xi32>
    %c1_i32 = arith.constant 1 : i32
    %3 = tpu.dynamic_rotate %2 by %c1_i32 dim 1 : vector<8x128xi32>, i32 -> vector<8x128xi32>
    %4 = vector.extract_strided_slice %3 {offsets = [0, 0], sizes = [1, 1], strides = [1, 1]} : vector<8x128xi32> to vector<1x1xi32>
    %c127_i32 = arith.constant 127 : i32
    %5 = vector.broadcast %c127_i32 : i32 to vector<1x1xi32>
    %6 = arith.cmpi eq, %4, %5 : vector<1x1xi32>
    %7 = arith.extui %6 : vector<1x1xi1> to vector<1x1xi32>
    %8 = arith.sitofp %7 : vector<1x1xi32> to vector<1x1xf32>
    %cst = arith.constant 1.000000e+00 : f32
    %9 = vector.broadcast %cst : f32 to vector<1x1xf32>
    %10 = arith.subf %9, %8 : vector<1x1xf32>
    %11 = tpu.iota {dimensions = array<i32: 1>} : vector<4x256xi32>
    %c16_i32 = arith.constant 16 : i32
    %12 = vector.broadcast %c16_i32 : i32 to vector<4x256xi32>
    %13 = arith.cmpi slt, %11, %12 : vector<4x256xi32>
    %c240_i32 = arith.constant 240 : i32
    %14 = vector.broadcast %c240_i32 : i32 to vector<4x256xi32>
    %15 = arith.cmpi sge, %11, %14 : vector<4x256xi32>
    %c0_2 = arith.constant 0 : index
    %c0_3 = arith.constant 0 : index
    %16 = vector.load %arg6[%c0_2, %c0_3] : memref<4x256xi32, #tpu.memory_space<vmem>>, vector<4x256xi32>
    %c0_i32 = arith.constant 0 : i32
    %17 = vector.broadcast %c0_i32 : i32 to vector<4x256xi32>
    %18 = arith.cmpi eq, %16, %17 : vector<4x256xi32>
    %c15_i32 = arith.constant 15 : i32
    %19 = vector.broadcast %c15_i32 : i32 to vector<4x256xi32>
    %20 = arith.cmpi eq, %16, %19 : vector<4x256xi32>
    %c16_i32_4 = arith.constant 16 : i32
    %21 = tpu.dynamic_rotate %1 by %c16_i32_4 dim 1 : vector<4x256xf32>, i32 -> vector<4x256xf32>
    %c240_i32_5 = arith.constant 240 : i32
    %22 = tpu.dynamic_rotate %1 by %c240_i32_5 dim 1 : vector<4x256xf32>, i32 -> vector<4x256xf32>
    %23 = vector.broadcast %8 : vector<1x1xf32> to vector<4x256xf32>
    %24 = arith.mulf %23, %21 : vector<4x256xf32>
    %25 = vector.broadcast %10 : vector<1x1xf32> to vector<4x256xf32>
    %26 = arith.mulf %25, %22 : vector<4x256xf32>
    %27 = arith.addf %24, %26 : vector<4x256xf32>
    %28 = vector.broadcast %8 : vector<1x1xf32> to vector<4x256xf32>
    %29 = arith.mulf %28, %22 : vector<4x256xf32>
    %30 = vector.broadcast %10 : vector<1x1xf32> to vector<4x256xf32>
    %31 = arith.mulf %30, %21 : vector<4x256xf32>
    %32 = arith.addf %29, %31 : vector<4x256xf32>
    %33 = arith.select %13, %32, %27 : vector<4x256xi1>, vector<4x256xf32>
    %34 = arith.select %15, %27, %32 : vector<4x256xi1>, vector<4x256xf32>
    %cst_6 = arith.constant 0.000000e+00 : f32
    %35 = vector.broadcast %cst_6 : f32 to vector<4x256xf32>
    %c1_i32_7 = arith.constant 1 : i32
    %36 = tpu.dynamic_rotate %33 by %c1_i32_7 dim 1 : vector<4x256xf32>, i32 -> vector<4x256xf32>
    %c255_i32 = arith.constant 255 : i32
    %37 = tpu.dynamic_rotate %33 by %c255_i32 dim 1 : vector<4x256xf32>, i32 -> vector<4x256xf32>
    %38 = vector.broadcast %8 : vector<1x1xf32> to vector<4x256xf32>
    %39 = arith.mulf %38, %36 : vector<4x256xf32>
    %40 = vector.broadcast %10 : vector<1x1xf32> to vector<4x256xf32>
    %41 = arith.mulf %40, %37 : vector<4x256xf32>
    %42 = arith.addf %39, %41 : vector<4x256xf32>
    %43 = vector.broadcast %8 : vector<1x1xf32> to vector<4x256xf32>
    %44 = arith.mulf %43, %37 : vector<4x256xf32>
    %45 = vector.broadcast %10 : vector<1x1xf32> to vector<4x256xf32>
    %46 = arith.mulf %45, %36 : vector<4x256xf32>
    %47 = arith.addf %44, %46 : vector<4x256xf32>
    %48 = arith.select %18, %47, %42 : vector<4x256xi1>, vector<4x256xf32>
    %49 = arith.select %20, %42, %47 : vector<4x256xi1>, vector<4x256xf32>
    %c0_8 = arith.constant 0 : index
    %c0_9 = arith.constant 0 : index
    %c0_10 = arith.constant 0 : index
    %50 = vector.load %arg2[%c0_8, %c0_9, %c0_10] : memref<9x4x4xbf16, #tpu.memory_space<vmem>>, vector<1x4x4xbf16>
    %51 = vector.shape_cast %50 : vector<1x4x4xbf16> to vector<4x4xbf16>
    %52 = arith.truncf %48 : vector<4x256xf32> to vector<4x256xbf16>
    %cst_11 = arith.constant dense<0.000000e+00> : vector<4x256xf32>
    %53 = tpu.matmul %51, %52, %cst_11 {dimension_numbers = #tpu.dot_dimension_numbers<[1], [0], [0], [1], [0, 0, 1, 1], [], []>} : vector<4x4xbf16>, vector<4x256xbf16>, vector<4x256xf32> -> vector<4x256xf32>
    %54 = arith.addf %35, %53 : vector<4x256xf32>
    %c1 = arith.constant 1 : index
    %c0_12 = arith.constant 0 : index
    %c0_13 = arith.constant 0 : index
    %55 = vector.load %arg2[%c1, %c0_12, %c0_13] : memref<9x4x4xbf16, #tpu.memory_space<vmem>>, vector<1x4x4xbf16>
    %56 = vector.shape_cast %55 : vector<1x4x4xbf16> to vector<4x4xbf16>
    %57 = arith.truncf %33 : vector<4x256xf32> to vector<4x256xbf16>
    %cst_14 = arith.constant dense<0.000000e+00> : vector<4x256xf32>
    %58 = tpu.matmul %56, %57, %cst_14 {dimension_numbers = #tpu.dot_dimension_numbers<[1], [0], [0], [1], [0, 0, 1, 1], [], []>} : vector<4x4xbf16>, vector<4x256xbf16>, vector<4x256xf32> -> vector<4x256xf32>
    %59 = arith.addf %54, %58 : vector<4x256xf32>
    %c2 = arith.constant 2 : index
    %c0_15 = arith.constant 0 : index
    %c0_16 = arith.constant 0 : index
    %60 = vector.load %arg2[%c2, %c0_15, %c0_16] : memref<9x4x4xbf16, #tpu.memory_space<vmem>>, vector<1x4x4xbf16>
    %61 = vector.shape_cast %60 : vector<1x4x4xbf16> to vector<4x4xbf16>
    %62 = arith.truncf %49 : vector<4x256xf32> to vector<4x256xbf16>
    %cst_17 = arith.constant dense<0.000000e+00> : vector<4x256xf32>
    %63 = tpu.matmul %61, %62, %cst_17 {dimension_numbers = #tpu.dot_dimension_numbers<[1], [0], [0], [1], [0, 0, 1, 1], [], []>} : vector<4x4xbf16>, vector<4x256xbf16>, vector<4x256xf32> -> vector<4x256xf32>
    %64 = arith.addf %59, %63 : vector<4x256xf32>
    %c1_i32_18 = arith.constant 1 : i32
    %65 = tpu.dynamic_rotate %1 by %c1_i32_18 dim 1 : vector<4x256xf32>, i32 -> vector<4x256xf32>
    %c255_i32_19 = arith.constant 255 : i32
    %66 = tpu.dynamic_rotate %1 by %c255_i32_19 dim 1 : vector<4x256xf32>, i32 -> vector<4x256xf32>
    %67 = vector.broadcast %8 : vector<1x1xf32> to vector<4x256xf32>
    %68 = arith.mulf %67, %65 : vector<4x256xf32>
    %69 = vector.broadcast %10 : vector<1x1xf32> to vector<4x256xf32>
    %70 = arith.mulf %69, %66 : vector<4x256xf32>
    %71 = arith.addf %68, %70 : vector<4x256xf32>
    %72 = vector.broadcast %8 : vector<1x1xf32> to vector<4x256xf32>
    %73 = arith.mulf %72, %66 : vector<4x256xf32>
    %74 = vector.broadcast %10 : vector<1x1xf32> to vector<4x256xf32>
    %75 = arith.mulf %74, %65 : vector<4x256xf32>
    %76 = arith.addf %73, %75 : vector<4x256xf32>
    %77 = arith.select %18, %76, %71 : vector<4x256xi1>, vector<4x256xf32>
    %78 = arith.select %20, %71, %76 : vector<4x256xi1>, vector<4x256xf32>
    %c3 = arith.constant 3 : index
    %c0_20 = arith.constant 0 : index
    %c0_21 = arith.constant 0 : index
    %79 = vector.load %arg2[%c3, %c0_20, %c0_21] : memref<9x4x4xbf16, #tpu.memory_space<vmem>>, vector<1x4x4xbf16>
    %80 = vector.shape_cast %79 : vector<1x4x4xbf16> to vector<4x4xbf16>
    %81 = arith.truncf %77 : vector<4x256xf32> to vector<4x256xbf16>
    %cst_22 = arith.constant dense<0.000000e+00> : vector<4x256xf32>
    %82 = tpu.matmul %80, %81, %cst_22 {dimension_numbers = #tpu.dot_dimension_numbers<[1], [0], [0], [1], [0, 0, 1, 1], [], []>} : vector<4x4xbf16>, vector<4x256xbf16>, vector<4x256xf32> -> vector<4x256xf32>
    %83 = arith.addf %64, %82 : vector<4x256xf32>
    %c4 = arith.constant 4 : index
    %c0_23 = arith.constant 0 : index
    %c0_24 = arith.constant 0 : index
    %84 = vector.load %arg2[%c4, %c0_23, %c0_24] : memref<9x4x4xbf16, #tpu.memory_space<vmem>>, vector<1x4x4xbf16>
    %85 = vector.shape_cast %84 : vector<1x4x4xbf16> to vector<4x4xbf16>
    %86 = arith.truncf %1 : vector<4x256xf32> to vector<4x256xbf16>
    %cst_25 = arith.constant dense<0.000000e+00> : vector<4x256xf32>
    %87 = tpu.matmul %85, %86, %cst_25 {dimension_numbers = #tpu.dot_dimension_numbers<[1], [0], [0], [1], [0, 0, 1, 1], [], []>} : vector<4x4xbf16>, vector<4x256xbf16>, vector<4x256xf32> -> vector<4x256xf32>
    %88 = arith.addf %83, %87 : vector<4x256xf32>
    %c5 = arith.constant 5 : index
    %c0_26 = arith.constant 0 : index
    %c0_27 = arith.constant 0 : index
    %89 = vector.load %arg2[%c5, %c0_26, %c0_27] : memref<9x4x4xbf16, #tpu.memory_space<vmem>>, vector<1x4x4xbf16>
    %90 = vector.shape_cast %89 : vector<1x4x4xbf16> to vector<4x4xbf16>
    %91 = arith.truncf %78 : vector<4x256xf32> to vector<4x256xbf16>
    %cst_28 = arith.constant dense<0.000000e+00> : vector<4x256xf32>
    %92 = tpu.matmul %90, %91, %cst_28 {dimension_numbers = #tpu.dot_dimension_numbers<[1], [0], [0], [1], [0, 0, 1, 1], [], []>} : vector<4x4xbf16>, vector<4x256xbf16>, vector<4x256xf32> -> vector<4x256xf32>
    %93 = arith.addf %88, %92 : vector<4x256xf32>
    %c1_i32_29 = arith.constant 1 : i32
    %94 = tpu.dynamic_rotate %34 by %c1_i32_29 dim 1 : vector<4x256xf32>, i32 -> vector<4x256xf32>
    %c255_i32_30 = arith.constant 255 : i32
    %95 = tpu.dynamic_rotate %34 by %c255_i32_30 dim 1 : vector<4x256xf32>, i32 -> vector<4x256xf32>
    %96 = vector.broadcast %8 : vector<1x1xf32> to vector<4x256xf32>
    %97 = arith.mulf %96, %94 : vector<4x256xf32>
    %98 = vector.broadcast %10 : vector<1x1xf32> to vector<4x256xf32>
    %99 = arith.mulf %98, %95 : vector<4x256xf32>
    %100 = arith.addf %97, %99 : vector<4x256xf32>
    %101 = vector.broadcast %8 : vector<1x1xf32> to vector<4x256xf32>
    %102 = arith.mulf %101, %95 : vector<4x256xf32>
    %103 = vector.broadcast %10 : vector<1x1xf32> to vector<4x256xf32>
    %104 = arith.mulf %103, %94 : vector<4x256xf32>
    %105 = arith.addf %102, %104 : vector<4x256xf32>
    %106 = arith.select %18, %105, %100 : vector<4x256xi1>, vector<4x256xf32>
    %107 = arith.select %20, %100, %105 : vector<4x256xi1>, vector<4x256xf32>
    %c6 = arith.constant 6 : index
    %c0_31 = arith.constant 0 : index
    %c0_32 = arith.constant 0 : index
    %108 = vector.load %arg2[%c6, %c0_31, %c0_32] : memref<9x4x4xbf16, #tpu.memory_space<vmem>>, vector<1x4x4xbf16>
    %109 = vector.shape_cast %108 : vector<1x4x4xbf16> to vector<4x4xbf16>
    %110 = arith.truncf %106 : vector<4x256xf32> to vector<4x256xbf16>
    %cst_33 = arith.constant dense<0.000000e+00> : vector<4x256xf32>
    %111 = tpu.matmul %109, %110, %cst_33 {dimension_numbers = #tpu.dot_dimension_numbers<[1], [0], [0], [1], [0, 0, 1, 1], [], []>} : vector<4x4xbf16>, vector<4x256xbf16>, vector<4x256xf32> -> vector<4x256xf32>
    %112 = arith.addf %93, %111 : vector<4x256xf32>
    %c7 = arith.constant 7 : index
    %c0_34 = arith.constant 0 : index
    %c0_35 = arith.constant 0 : index
    %113 = vector.load %arg2[%c7, %c0_34, %c0_35] : memref<9x4x4xbf16, #tpu.memory_space<vmem>>, vector<1x4x4xbf16>
    %114 = vector.shape_cast %113 : vector<1x4x4xbf16> to vector<4x4xbf16>
    %115 = arith.truncf %34 : vector<4x256xf32> to vector<4x256xbf16>
    %cst_36 = arith.constant dense<0.000000e+00> : vector<4x256xf32>
    %116 = tpu.matmul %114, %115, %cst_36 {dimension_numbers = #tpu.dot_dimension_numbers<[1], [0], [0], [1], [0, 0, 1, 1], [], []>} : vector<4x4xbf16>, vector<4x256xbf16>, vector<4x256xf32> -> vector<4x256xf32>
    %117 = arith.addf %112, %116 : vector<4x256xf32>
    %c8 = arith.constant 8 : index
    %c0_37 = arith.constant 0 : index
    %c0_38 = arith.constant 0 : index
    %118 = vector.load %arg2[%c8, %c0_37, %c0_38] : memref<9x4x4xbf16, #tpu.memory_space<vmem>>, vector<1x4x4xbf16>
    %119 = vector.shape_cast %118 : vector<1x4x4xbf16> to vector<4x4xbf16>
    %120 = arith.truncf %107 : vector<4x256xf32> to vector<4x256xbf16>
    %cst_39 = arith.constant dense<0.000000e+00> : vector<4x256xf32>
    %121 = tpu.matmul %119, %120, %cst_39 {dimension_numbers = #tpu.dot_dimension_numbers<[1], [0], [0], [1], [0, 0, 1, 1], [], []>} : vector<4x4xbf16>, vector<4x256xbf16>, vector<4x256xf32> -> vector<4x256xf32>
    %122 = arith.addf %117, %121 : vector<4x256xf32>
    %c0_40 = arith.constant 0 : index
    %c0_41 = arith.constant 0 : index
    %123 = vector.load %arg3[%c0_40, %c0_41] : memref<4x1xf32, #tpu.memory_space<vmem>>, vector<4x1xf32>
    %124 = vector.broadcast %123 : vector<4x1xf32> to vector<4x256xf32>
    %125 = arith.addf %122, %124 : vector<4x256xf32>
    %cst_42 = arith.constant dense<0.000000e+00> : vector<4xf32>
    %126 = vector.multi_reduction <add>, %125, %cst_42 [1] : vector<4x256xf32> to vector<4xf32>
    %127 = vector.shape_cast %126 : vector<4xf32> to vector<4x1xf32>
    %cst_43 = arith.constant 3.906250e-03 : f32
    %128 = vector.broadcast %cst_43 : f32 to vector<4x1xf32>
    %129 = arith.mulf %127, %128 : vector<4x1xf32>
    %130 = vector.broadcast %129 : vector<4x1xf32> to vector<4x256xf32>
    %131 = arith.subf %125, %130 : vector<4x256xf32>
    %132 = arith.mulf %131, %131 : vector<4x256xf32>
    %cst_44 = arith.constant dense<0.000000e+00> : vector<4xf32>
    %133 = vector.multi_reduction <add>, %132, %cst_44 [1] : vector<4x256xf32> to vector<4xf32>
    %134 = vector.shape_cast %133 : vector<4xf32> to vector<4x1xf32>
    %cst_45 = arith.constant 3.906250e-03 : f32
    %135 = vector.broadcast %cst_45 : f32 to vector<4x1xf32>
    %136 = arith.mulf %134, %135 : vector<4x1xf32>
    %cst_46 = arith.constant 9.99999974E-6 : f32
    %137 = vector.broadcast %cst_46 : f32 to vector<4x1xf32>
    %138 = arith.addf %136, %137 : vector<4x1xf32>
    %139 = math.rsqrt %138 : vector<4x1xf32>
    %140 = vector.broadcast %139 : vector<4x1xf32> to vector<4x256xf32>
    %141 = arith.mulf %131, %140 : vector<4x256xf32>
    %c0_47 = arith.constant 0 : index
    %c0_48 = arith.constant 0 : index
    %142 = vector.load %arg4[%c0_47, %c0_48] : memref<4x1xf32, #tpu.memory_space<vmem>>, vector<4x1xf32>
    %143 = vector.broadcast %142 : vector<4x1xf32> to vector<4x256xf32>
    %144 = arith.mulf %141, %143 : vector<4x256xf32>
    %c0_49 = arith.constant 0 : index
    %c0_50 = arith.constant 0 : index
    %145 = vector.load %arg5[%c0_49, %c0_50] : memref<4x1xf32, #tpu.memory_space<vmem>>, vector<4x1xf32>
    %146 = vector.broadcast %145 : vector<4x1xf32> to vector<4x256xf32>
    %147 = arith.addf %144, %146 : vector<4x256xf32>
    %c0_51 = arith.constant 0 : index
    %148 = memref.load %arg7[%c0_51] : memref<2xf32, #tpu.memory_space<smem>>
    %cst_52 = arith.constant 0.000000e+00 : f32
    %149 = vector.broadcast %cst_52 : f32 to vector<4x256xf32>
    %150 = arith.cmpf oge, %147, %149 : vector<4x256xf32>
    %151 = vector.broadcast %148 : f32 to vector<4x256xf32>
    %152 = arith.mulf %151, %147 : vector<4x256xf32>
    %153 = arith.select %150, %147, %152 : vector<4x256xi1>, vector<4x256xf32>
    %c1_53 = arith.constant 1 : index
    %154 = memref.load %arg7[%c1_53] : memref<2xf32, #tpu.memory_space<smem>>
    %cst_54 = arith.constant 0.000000e+00 : f32
    %155 = vector.broadcast %cst_54 : f32 to vector<4x256xf32>
    %156 = arith.cmpf oge, %153, %155 : vector<4x256xf32>
    %157 = vector.broadcast %154 : f32 to vector<4x256xf32>
    %158 = arith.mulf %157, %153 : vector<4x256xf32>
    %159 = arith.select %156, %153, %158 : vector<4x256xi1>, vector<4x256xf32>
    %160 = arith.addf %159, %1 : vector<4x256xf32>
    %c0_55 = arith.constant 0 : index
    %c0_56 = arith.constant 0 : index
    %c0_57 = arith.constant 0 : index
    %161 = vector.load %arg8[%c0_55, %c0_56, %c0_57] : memref<1x4x256xf32, #tpu.memory_space<vmem>>, vector<1x4x256xf32>
    %162 = vector.shape_cast %161 : vector<1x4x256xf32> to vector<4x256xf32>
    %163 = vector.shape_cast %160 : vector<4x256xf32> to vector<1x4x256xf32>
    tpu.vector_store %arg8[%c0_55, %c0_56, %c0_57], %163 {strides = array<i32>} : memref<1x4x256xf32, #tpu.memory_space<vmem>>, vector<1x4x256xf32>,
    return
  }
  func.func @transform_0(%arg0: i32) -> (i32, i32, i32) {
    %c0_i32 = arith.constant 0 : i32
    %c0_i32_0 = arith.constant 0 : i32
    %c0_i32_1 = arith.constant 0 : i32
    return %arg0, %c0_i32, %c0_i32_0 : i32, i32, i32
  }
  func.func @transform_1(%arg0: i32) -> (i32, i32, i32) {
    %c0_i32 = arith.constant 0 : i32
    %c0_i32_0 = arith.constant 0 : i32
    %c0_i32_1 = arith.constant 0 : i32
    %c0_i32_2 = arith.constant 0 : i32
    return %c0_i32, %c0_i32_0, %c0_i32_1 : i32, i32, i32
  }
  func.func @transform_2(%arg0: i32) -> (i32, i32) {
    %c0_i32 = arith.constant 0 : i32
    %c0_i32_0 = arith.constant 0 : i32
    %c0_i32_1 = arith.constant 0 : i32
    return %c0_i32, %c0_i32_0 : i32, i32
  }
  func.func @transform_3(%arg0: i32) -> (i32, i32) {
    %c0_i32 = arith.constant 0 : i32
    %c0_i32_0 = arith.constant 0 : i32
    %c0_i32_1 = arith.constant 0 : i32
    return %c0_i32, %c0_i32_0 : i32, i32
  }
  func.func @transform_4(%arg0: i32) -> (i32, i32) {
    %c0_i32 = arith.constant 0 : i32
    %c0_i32_0 = arith.constant 0 : i32
    %c0_i32_1 = arith.constant 0 : i32
    return %c0_i32, %c0_i32_0 : i32, i32
  }
  func.func @transform_5(%arg0: i32) -> (i32, i32) {
    %c0_i32 = arith.constant 0 : i32
    %c0_i32_0 = arith.constant 0 : i32
    %c0_i32_1 = arith.constant 0 : i32
    return %c0_i32, %c0_i32_0 : i32, i32
  }
  func.func @transform_6(%arg0: i32) -> i32 {
    %c0_i32 = arith.constant 0 : i32
    %c0_i32_0 = arith.constant 0 : i32
    return %c0_i32 : i32
  }
  func.func @transform_7(%arg0: i32) -> (i32, i32, i32) {
    %c0_i32 = arith.constant 0 : i32
    %c0_i32_0 = arith.constant 0 : i32
    %c0_i32_1 = arith.constant 0 : i32
    return %arg0, %c0_i32, %c0_i32_0 : i32, i32, i32
  }
}

</mosaic_0001>

<bundles_post_ra>
// kernel: tpu_custom_call.1
= control target key start
LH: loop header
LB: loop body
LE: loop exit
PB: predicated region body
PF: predicated region fallthrough
CT: control target
= control target key end

     0   :  { %12 = vsyncpa [#allocation4], 0  ;;  %s1695_s0 = inlined_call_operand.vmem [shape: f32[2,4,256], index: 0, kind: input, shape index: {}]   ;;  %s1696_s1 = inlined_call_operand.vmem [shape: bf16[9,4,4], index: 1, kind: input, shape index: {}]   ;;  %s1697_s2 = inlined_call_operand.vmem [shape: f32[4,1], index: 2, kind: input, shape index: {}]   ;;  %s1698_s3 = inlined_call_operand.vmem [shape: f32[4,1], index: 3, kind: input, shape index: {}]   ;;  %s1699_s4 = inlined_call_operand.vmem [shape: f32[4,1], index: 4, kind: input, shape index: {}]   ;;  %s1700_s5 = inlined_call_operand.vmem [shape: s32[4,256], index: 5, kind: input, shape index: {}]   ;;  %s1701_s6 = inlined_call_operand.vmem [shape: f32[2], index: 6, kind: input, shape index: {}]   ;;  %s1702_s7 = inlined_call_operand.hbm [shape: f32[2,4,256], index: 7, kind: output, shape index: {}]  }
   0x1   :  { %13 = vsyncpa [#allocation3], 0 }
   0x2   :  { %15 = vsyncpa [#allocation3 + $0x1], 0  ;;  %s1366_s24 = smov 0   ;;  %s1368_s25 = smov 0  }
   0x3   :  { %s1370_s26 = smov 0   ;;  %s1372_s27 = smov 0  }
   0x4 LB: > { %s1387_s28 = sadd.s32 4294967295, %s1316_s27   ;;  %s1126_s29 = sadd.s32 4294967294, %s1316_s27   ;;  %s1316_s27 = sphi %s1372_s27, %s1709_s27   ;;  %s1312_s26 = sphi %s1370_s26, %s1708_s26   ;;  %s1308_s25 = sphi %s1368_s25, %s1707_s25   ;;  %s1304_s24 = sphi %s1366_s24, %s1706_s24  }
   0x5   : > { %s1391_s30 = sadd.s32 1, %s1316_s27   ;;  %s180_s8 = sadd.s32 1, %s1312_s26 }
   0x6   : > { %s177_s9 = ssub.s32 %s1316_s27, %s1391_s30  ;;  %p190_p0 = scmp.ne.s32.totalorder %s1312_s26, %s1308_s25 }
   0x7   : > { %p178_p1 = scmp.eq.s32.totalorder %s177_s9, 0  ;;  %p191_p2 = scmp.eq.s32.totalorder %s1387_s28, 1 }
   0x8   : > { %p196_p3 = scmp.ne.s32.totalorder %s1308_s25, %s1304_s24  ;;  %p197_p4 = scmp.eq.s32.totalorder %s1126_s29, 1 }
   0x9   : > { %s1402_s10 = scalar_select %p178_p1, %s1312_s26, %s180_s8  }
   0xa   : > { %p1404_p5 = por %p191_p2, %p190_p0  ;;  %p1408_p6 = por %p197_p4, %p196_p3 }
   0xb   : > { %p1127_p7 = scmp.ge.s32.totalorder %s1316_s27, 1  ;;  %p204_p8 = scmp.lt.s32.totalorder %s1316_s27, 3 }
   0xc   : > { %p1188_p9 = scmp.eq.s32.totalorder %s1387_s28, 0  ;;  %s232_s16 = sshll.u32 %s1701_s6, 4  ;;  %s233_s16 = int_to_ptr.vmem [resolvable:$true] %s232_s16 }
   0xd   : > { %p1415_p10 = pnand %p1127_p7, %p204_p8  ;;  %s1235_s17 = scalar_lea.vmem %s233_s16, 16 }
   0xe   : > { %p1236_p13 = scmp.ne.s32.totalorder %s233_s16, %s1235_s17  ;;  %p1243_p3 = scmp.lt.s32.totalorder %s233_s16, %s233_s16 }
   0xf   : > { %p1180_p11 = pneg %p1415_p10  ;;  %p1244_p4 = scmp.lt.s32.totalorder %s1235_s17, %s1235_s17 }
  0x11   : > { %p1181_p12 = pnand %p1188_p9, %p1180_p11  ;;  %p1245_p7 = por %p1244_p4, %p1243_p3 }
  0x13   : > { %p1237_p0 = pneg %p1181_p12 }
  0x15   : > { %p1238_p1 = pnand %p1237_p0, %p1236_p13 }
  0x17   : > { %p1239_p2 = pneg %p1238_p1 }
  0x19   : > { %p1246_p8 = pnand %p1245_p7, %p1239_p2 }
  0x1b   : > { %1249 = shalt.err (!%p1246_p8)
}
  0x1c   : > { %s1318_s18 = smov [#allocation2]   ;;  %253 = sbr.rel (%p1415_p10) target bundleno = 936 (0x3a8), region = 48 }
  0x1d   : > { %1183 = dma.vmem_to_smem (!%p1181_p12), %s233_s16, 16, %s1318_s18, [#allocation4]  }
  0x23   : > { %1295 = dma.done.wait (%p1188_p9), [#allocation4], 16  }
  0x24   : > { %1297 = vsyncadd (%p1188_p9), [#allocation4], 4294967280 }
  0x25   : > { %259 = sfence }
  0x26   : > { %v293_v0 = vlaneseq  ;;  %p286_p11 = scmp.lt.s32.totalorder %s1387_s28, 1  ;;  %s1319_s20 = smov 1   ;;  %v1322_v5 = vmov 0.0   ;;  %vm399_vm3 = vcmask 1041408   ;;  %v1323_v29 = vmov 0   ;;  %v1526_v55 = vld [vmem:[%s1700_s5] sm:$0xff] }
  0x27   : > { %s1320_s8 = smov 16   ;;  %s1321_s9 = smov 112   ;;  %438 = vmatprep.mubr.bf16.mxu0 %v1323_v29  ;;  %488 = vmatprep.mubr.bf16.mxu1 %v1323_v29  ;;  %v1136_v32 = vld [vmem:[%s1696_s1 + $0x2] sm:$0x3]  ;;  %vm395_vm4 = vcmask 31744   ;;  %vm307_vm8 = vcmp.eq.s32.totalorder %v1526_v55, 0 }
  0x28   : > { %v1433_v1 = vand.u32 127, %v293_v0  ;;  %s287_s19 = scalar_select %p286_p11, %s1387_s28, 1  ;;  %1230 = vset.pattern.permute.xlu1 %v1323_v29  ;;  %1231 = vset.pattern.permute.xlu0 %v1323_v29  ;;  %v972_v38 = vld [vmem:[%s1697_s2] sm:$0xf]  ;;  %vm308_vm9 = vcmp.eq.s32.totalorder %v1526_v55, 15  ;;  %vm980_vm10 = vcmask 1043456  }
  0x29   : > { %s1324_s15 = smov 127   ;;  %s283_s16 = sand.u32 1, %s1308_s25  }
  0x2a   : > { %295 = vrot.lane.b32.xlu0 %v1433_v1, %s1319_s20  ;;  %s1168_s21 = sshll.u32 %s287_s19, 3  ;;  %vm322_vm1 = vcmp.lt.s32.totalorder %v1433_v1, 112  ;;  %vm302_vm2 = vcmp.lt.s32.totalorder %v1433_v1, 16  ;;  %v301_v34 = vadd.s32 128, %v1433_v1  ;;  %vm353_vm6 = vcmp.lt.s32.totalorder %v1433_v1, 1  ;;  %s1132_s17 = sshll.u32 %s283_s16, 3 }
  0x2b   : > { %s290_s29 = scalar_lea.vmem %s1695_s0, %s1168_s21  ;;  %vm360_vm7 = vcmp.lt.s32.totalorder %v1433_v1, 127  ;;  %s1169_s18 = sshll.u32 %s1387_s28, 7 }
  0x2c   : > { %v1441_v2 = vld [vmem:[%s290_s29] sm:$0xff]  ;;  %vm305_vm5 = vcmp.ge.s32.totalorder %v301_v34, 240  ;;  %s285_s19 = scalar_lea.vmem [#allocation5], %s1132_s17  ;;  %s1653_s23 = scalar_lea.hbm %s1702_s7, %s1169_s18 }
  0x2d   : > { %v1445_v3 = vcombine.high %v1441_v2, %v1441_v2  ;;  %s1041_s29 = scalar_lea.sflag [#allocation3], %s283_s16 }
  0x2e   : > { %312 = vrot.lane.b32.xlu0 %v1441_v2, %s1320_s8 }
  0x2f   : > { %314 = vrot.lane.b32.xlu1 %v1445_v3, %s1320_s8  ;;  %s1325_s8 = smov [#allocation5]  }
  0x32   : > { %320 = vrot.lane.b32.xlu0 %v1445_v3, %s1321_s9 }
  0x33   : > { %318 = vrot.lane.b32.xlu1 %v1441_v2, %s1321_s9  ;;  %s1254_s9 = sshll.u32 %s1325_s8, 4  ;;  %s1255_s9 = int_to_ptr.vmem [resolvable:$false] %s1254_s9 }
  0x9c   : > { %v296_v4 = vpop.permute.xlu0 %295 }
  0x9d   : > { %vm297_vm0 = vcmp.eq.s32.totalorder %v296_v4, 127 }
  0x9e   : > { %v1135_v6 = vsel %vm297_vm0, 1.0, %v1322_v5 }
  0x9f   : > { %1170 = vpush %v1135_v6  ;;  %v300_v7 = vsub.f32 1.0, %v1135_v6 }
  0xa0   : > { %v313_v8 = vpop.permute.xlu0 %312 }
  0xa1   : > { %1172 = vpush %v300_v7  ;;  %v315_v9 = vpop.permute.xlu1 %314 }
  0xa2   : > { %v316_v14 = vsel %vm302_vm2, %v313_v8, %v315_v9  ;;  %v317_v15 = vsel %vm302_vm2, %v315_v9, %v313_v8  ;;  %v652_v8 = vpack.c.bf16 %v1445_v3, %v1445_v3  ;;  %v651_v9 = vpack.c.bf16 %v1441_v2, %v1441_v2 }
  0xa4   : > { %v321_v10 = vpop.permute.xlu0 %320 }
  0xa5   : > { %v319_v11 = vpop.permute.xlu1 %318 }
  0xa6   : > { %v323_v12 = vsel %vm322_vm1, %v319_v11, %v321_v10  ;;  %v324_v16 = vsel %vm322_vm1, %v321_v10, %v319_v11 }
  0xd0   : > { %s1171_s13 = spop %1170 }
  0xd1   : > { %v1453_v13 = vstv %s1171_s13  ;;  %s1256_s13 = scalar_lea.vmem %s1255_s9, 256 }
  0xd2   : > { %s1173_s14 = spop %1172  ;;  %v339_v17 = vmul.f32 %v1453_v13, %v323_v12  ;;  %v330_v19 = vmul.f32 %v1453_v13, %v316_v14  ;;  %v329_v21 = vmul.f32 %v1453_v13, %v317_v15  ;;  %v340_v35 = vmul.f32 %v1453_v13, %v324_v16 }
  0xd3   : > { %v1460_v18 = vstv %s1173_s14  ;;  %s1017_s14 = sld [smem:[#allocation2]] }
  0xd4   : > { %v336_v20 = vmul.f32 %v1460_v18, %v324_v16  ;;  %v335_v22 = vmul.f32 %v1460_v18, %v323_v12  ;;  %v341_v23 = vmul.f32 %v1460_v18, %v317_v15  ;;  %v342_v33 = vmul.f32 %v1460_v18, %v316_v14 }
  0xd6   : > { %v338_v24 = vadd.f32 %v336_v20, %v330_v19  ;;  %v337_v25 = vadd.f32 %v335_v22, %v329_v21  ;;  %v1467_v26 = vadd.f32 %v341_v23, %v339_v17  ;;  %v344_v36 = vadd.f32 %v342_v33, %v340_v35 }
  0xd8   : > { %351 = vrot.lane.b32.xlu0 %v338_v24, %s1319_s20  ;;  %v345_v27 = vsel %vm302_vm2, %v1467_v26, %v337_v25  ;;  %v394_v28 = vpack.c.bf16 %v338_v24, %v338_v24  ;;  %v1494_v37 = vsel %vm305_vm5, %v338_v24, %v344_v36 }
  0xd9   : > { %349 = vrot.lane.b32.xlu1 %v345_v27, %s1319_s20  ;;  %v393_v30 = vpack.c.bf16 %v345_v27, %v345_v27 }
  0xda   : > { %1137 = vmatprep.subr.msk.bf16.mxu0 %vm399_vm3, %v394_v28 }
  0xdb   : > { %v401_v31 = vsel %vm399_vm3, %v393_v30, 0 }
  0xdc   : > { %358 = vrot.lane.b32.xlu0 %v338_v24, %s1324_s15  ;;  %407 = vmatpush1.bf16.msra.mxu0 %v401_v31 }
  0xdd   : > { %356 = vrot.lane.b32.xlu1 %v345_v27, %s1324_s15 }
  0xdf   : > { %1138 = vmatmul.mubr.msk.bf16.vlgmr.msra.gmra.mrb[0].mxu0 %vm395_vm4, %v1136_v32 }
  0xe0   : > { %558 = vrot.lane.b32.xlu0 %v1445_v3, %s1319_s20  ;;  %545 = vmatprep.mubr.bf16.mxu0 %v1323_v29 }
  0xe1   : > { %556 = vrot.lane.b32.xlu1 %v1441_v2, %s1319_s20 }
  0xe4   : > { %564 = vrot.lane.b32.xlu0 %v1445_v3, %s1324_s15 }
  0xe5   : > { %562 = vrot.lane.b32.xlu1 %v1441_v2, %s1324_s15 }
  0xe8   : > { %766 = vrot.lane.b32.xlu0 %v1494_v37, %s1319_s20 }
  0xe9   : > { %764 = vrot.lane.b32.xlu1 %v1467_v26, %s1319_s20  ;;  %s1055_s20 = sshll.u32 %s285_s19, 4  ;;  %s1655_s20 = int_to_ptr.vmem [resolvable:$true] %s1055_s20 }
  0xea   : > { %s1250_s28 = scalar_lea.vmem %s1655_s20, 128  ;;  %p1257_p13 = scmp.lt.s32.totalorder %s1655_s20, %s1255_s9 }
  0xeb   : > { %p1251_p9 = scmp.ne.s32.totalorder %s1655_s20, %s1250_s28  ;;  %p1258_p0 = scmp.lt.s32.totalorder %s1256_s13, %s1250_s28 }
  0xec   : > { %772 = vrot.lane.b32.xlu0 %v1494_v37, %s1324_s15 }
  0xed   : > { %770 = vrot.lane.b32.xlu1 %v1467_v26, %s1324_s15  ;;  %s1162_s15 = sld [smem:[#allocation2 + $0x1]]  ;;  %p1252_p10 = pnand %p1251_p9, %p1404_p5 }
  0xee   : > { %p1259_p1 = por %p1258_p0, %p1257_p13 }
  0xef   : > { %p1253_p12 = pneg %p1252_p10 }
  0xf1   : > { %975 = vperm.xlu1 %1230, %v972_v38   ;;  %p1260_p2 = pnand %p1259_p1, %p1253_p12 }
 0x14a   : > { %v352_v39 = vpop.permute.xlu0 %351 }
 0x14b   : > { %v350_v40 = vpop.permute.xlu1 %349 }
 0x14c   : > { %v354_v41 = vsel %vm353_vm6, %v350_v40, %v352_v39  ;;  %v355_v42 = vsel %vm353_vm6, %v352_v39, %v350_v40 }
 0x14d   : > { %v363_v44 = vmul.f32 %v355_v42, %v1453_v13  ;;  %v364_v45 = vmul.f32 %v354_v41, %v1453_v13  ;;  %v371_v47 = vmul.f32 %v355_v42, %v1460_v18  ;;  %v372_v48 = vmul.f32 %v354_v41, %v1460_v18 }
 0x14e   : > { %v359_v43 = vpop.permute.xlu0 %358 }
 0x14f   : > { %v357_v46 = vpop.permute.xlu1 %356 }
 0x150   : > { %v361_v49 = vsel %vm360_vm7, %v357_v46, %v359_v43  ;;  %v362_v50 = vsel %vm360_vm7, %v359_v43, %v357_v46 }
 0x151   : > { %v365_v51 = vmul.f32 %v361_v49, %v1460_v18  ;;  %v366_v52 = vmul.f32 %v362_v50, %v1460_v18  ;;  %v369_v53 = vmul.f32 %v361_v49, %v1453_v13  ;;  %v370_v54 = vmul.f32 %v362_v50, %v1453_v13 }
 0x152   : > { %v559_v56 = vpop.permute.xlu0 %558  ;;  %v657_v49 = vsel %vm399_vm3, %v651_v9, 0 }
 0x153   : > { %v367_v57 = vadd.f32 %v365_v51, %v363_v44  ;;  %v368_v58 = vadd.f32 %v366_v52, %v364_v45  ;;  %v373_v59 = vadd.f32 %v371_v47, %v369_v53  ;;  %v374_v60 = vadd.f32 %v372_v48, %v370_v54  ;;  %v557_v61 = vpop.permute.xlu1 %556  ;;  %v385_v44 = vld [vmem:[%s1696_s1] sm:$0x3]  ;;  %v1141_v48 = vld [vmem:[%s1696_s1 + $0x4] sm:$0x3] }
 0x154   : > { %v560_v62 = vsel %vm353_vm6, %v557_v61, %v559_v56  ;;  %v561_v63 = vsel %vm353_vm6, %v559_v56, %v557_v61 }
 0x155   : > { %v377_v0 = vcombine.low %v373_v59, %v374_v60  ;;  %v381_v4 = vcombine.low %v367_v57, %v368_v58  ;;  %v568_v5 = vmul.f32 %v561_v63, %v1453_v13  ;;  %v569_v6 = vmul.f32 %v560_v62, %v1453_v13 }
 0x156   : > { %v565_v7 = vpop.permute.xlu0 %564  ;;  %v576_v10 = vmul.f32 %v561_v63, %v1460_v18  ;;  %v577_v11 = vmul.f32 %v560_v62, %v1460_v18 }
 0x157   : > { %v563_v12 = vpop.permute.xlu1 %562  ;;  %v383_v14 = vsel %vm307_vm8, %v377_v0, %v381_v4  ;;  %v384_v15 = vsel %vm308_vm9, %v381_v4, %v377_v0 }
 0x158   : > { %v566_v16 = vsel %vm360_vm7, %v563_v12, %v565_v7  ;;  %v567_v17 = vsel %vm360_vm7, %v565_v7, %v563_v12  ;;  %v387_v19 = vcombine.high %v383_v14, %v383_v14  ;;  %v500_v20 = vcombine.high %v384_v15, %v384_v15  ;;  %v1147_v12 = vld [vmem:[%s1696_s1 + $0x8] sm:$0x3] }
 0x159   : > { %v570_v21 = vmul.f32 %v566_v16, %v1460_v18  ;;  %v571_v22 = vmul.f32 %v567_v17, %v1460_v18  ;;  %v574_v23 = vmul.f32 %v566_v16, %v1453_v13  ;;  %v575_v24 = vmul.f32 %v567_v17, %v1453_v13 }
 0x15a   : > { %v767_v25 = vpop.permute.xlu0 %766  ;;  %v390_v27 = vpack.c.bf16 %v387_v19, %v387_v19  ;;  %v503_v28 = vpack.c.bf16 %v500_v20, %v500_v20  ;;  %v389_v30 = vpack.c.bf16 %v383_v14, %v383_v14  ;;  %v502_v31 = vpack.c.bf16 %v384_v15, %v384_v15 }
 0x15b   : > { %v572_v32 = vadd.f32 %v570_v21, %v568_v5  ;;  %v573_v33 = vadd.f32 %v571_v22, %v569_v6  ;;  %v578_v34 = vadd.f32 %v576_v10, %v574_v23  ;;  %v579_v35 = vadd.f32 %v577_v11, %v575_v24  ;;  %v765_v36 = vpop.permute.xlu1 %764  ;;  %v1144_v11 = vld [vmem:[%s1696_s1 + $0x6] sm:$0x3]  ;;  %v1150_v24 = vld [vmem:[%s1696_s1 + $0xa] sm:$0x3] }
 0x15c   : > { %v768_v38 = vsel %vm353_vm6, %v765_v36, %v767_v25  ;;  %v769_v39 = vsel %vm353_vm6, %v767_v25, %v765_v36  ;;  %1139 = vmatprep.subr.msk.bf16.mxu1 %vm399_vm3, %v390_v27  ;;  %1142 = vmatprep.subr.msk.bf16.mxu0 %vm399_vm3, %v503_v28  ;;  %v451_v40 = vsel %vm399_vm3, %v389_v30, 0  ;;  %v508_v43 = vsel %vm399_vm3, %v502_v31, 0  ;;  %v1153_v27 = vld [vmem:[%s1696_s1 + $0xc] sm:$0x3]  ;;  %v1156_v30 = vld [vmem:[%s1696_s1 + $0xe] sm:$0x3] }
 0x15d   : > { %v582_v41 = vcombine.low %v578_v34, %v579_v35  ;;  %v586_v42 = vcombine.low %v572_v32, %v573_v33  ;;  %457 = vmatpush1.bf16.msra.mxu1 %v451_v40  ;;  %v776_v45 = vmul.f32 %v769_v39, %v1453_v13  ;;  %v777_v46 = vmul.f32 %v768_v38, %v1453_v13  ;;  %v1159_v31 = vld [vmem:[%s1696_s1 + $0x10] sm:$0x3] }
 0x15e   : > { %514 = vmatpush1.bf16.msra.mxu0 %v508_v43  ;;  %v773_v47 = vpop.permute.xlu0 %772  ;;  %v784_v50 = vmul.f32 %v769_v39, %v1460_v18  ;;  %v785_v51 = vmul.f32 %v768_v38, %v1460_v18  ;;  %v860_v14 = vpack.c.bf16 %v1494_v37, %v1494_v37  ;;  %v859_v23 = vpack.c.bf16 %v1467_v26, %v1467_v26 }
 0x15f   : > { %v588_v52 = vsel %vm307_vm8, %v582_v41, %v586_v42  ;;  %v771_v53 = vpop.permute.xlu1 %770  ;;  %1148 = vmatprep.subr.msk.bf16.mxu0 %vm399_vm3, %v652_v8  ;;  %v589_v54 = vsel %vm308_vm9, %v586_v42, %v582_v41 }
 0x160   : > { %v774_v56 = vsel %vm360_vm7, %v771_v53, %v773_v47  ;;  %v775_v57 = vsel %vm360_vm7, %v773_v47, %v771_v53  ;;  %1140 = vmatmul.mubr.msk.bf16.vlgmr.msra.gmra.mrb[0].mxu1 %vm395_vm4, %v385_v44  ;;  %v593_v58 = vcombine.high %v588_v52, %v588_v52  ;;  %v595_v59 = vpack.c.bf16 %v588_v52, %v588_v52 }
 0x161   : > { %v778_v60 = vmul.f32 %v774_v56, %v1460_v18  ;;  %v779_v61 = vmul.f32 %v775_v57, %v1460_v18  ;;  %v782_v62 = vmul.f32 %v774_v56, %v1453_v13  ;;  %v783_v63 = vmul.f32 %v775_v57, %v1453_v13  ;;  %1143 = vmatmul.mubr.msk.bf16.vlgmr.msra.gmra.mrb[4].mxu0 %vm395_vm4, %v1141_v48 }
 0x162   : > { %v596_v0 = vpack.c.bf16 %v593_v58, %v593_v58  ;;  %663 = vmatpush1.bf16.msra.mxu0 %v657_v49  ;;  %v708_v4 = vcombine.high %v589_v54, %v589_v54  ;;  %638 = vmatprep.mubr.bf16.mxu1 %v1323_v29  ;;  %v601_v18 = vsel %vm399_vm3, %v595_v59, 0  ;;  %v710_v9 = vpack.c.bf16 %v589_v54, %v589_v54 }
 0x163   : > { %v780_v1 = vadd.f32 %v778_v60, %v776_v45  ;;  %v781_v5 = vadd.f32 %v779_v61, %v777_v46  ;;  %v786_v6 = vadd.f32 %v784_v50, %v782_v62  ;;  %v787_v7 = vadd.f32 %v785_v51, %v783_v63  ;;  %694 = vmatprep.mubr.bf16.mxu0 %v1323_v29 }
 0x164   : > { %1145 = vmatprep.subr.msk.bf16.mxu1 %vm399_vm3, %v596_v0  ;;  %v711_v8 = vpack.c.bf16 %v708_v4, %v708_v4  ;;  %v716_v17 = vsel %vm399_vm3, %v710_v9, 0  ;;  %v865_v28 = vsel %vm399_vm3, %v859_v23, 0 }
 0x165   : > { %v790_v13 = vcombine.low %v786_v6, %v787_v7  ;;  %v794_v10 = vcombine.low %v780_v1, %v781_v5  ;;  %607 = vmatpush1.bf16.msra.mxu1 %v601_v18 }
 0x166   : > { %1151 = vmatprep.subr.msk.bf16.mxu1 %vm399_vm3, %v711_v8 }
 0x167   : > { %v796_v15 = vsel %vm307_vm8, %v790_v13, %v794_v10  ;;  %v797_v16 = vsel %vm308_vm9, %v794_v10, %v790_v13 }
 0x168   : > { %1146 = vmatmul.mubr.msk.bf16.vlgmr.msra.gmra.mrb[4].mxu1 %vm395_vm4, %v1144_v11  ;;  %v801_v19 = vcombine.high %v796_v15, %v796_v15  ;;  %v803_v20 = vpack.c.bf16 %v796_v15, %v796_v15  ;;  %v916_v21 = vcombine.high %v797_v16, %v797_v16  ;;  %v918_v25 = vpack.c.bf16 %v797_v16, %v797_v16 }
 0x169   : > { %1149 = vmatmul.mubr.msk.bf16.vlgmr.msra.gmra.mrb[8].mxu0 %vm395_vm4, %v1147_v12  ;;  %722 = vmatpush1.bf16.msra.mxu1 %v716_v17 }
 0x16a   : > { %1157 = vmatprep.subr.msk.bf16.mxu1 %vm399_vm3, %v860_v14  ;;  %v804_v22 = vpack.c.bf16 %v801_v19, %v801_v19  ;;  %753 = vmatprep.mubr.bf16.mxu1 %v1323_v29  ;;  %v809_v37 = vsel %vm399_vm3, %v803_v20, 0  ;;  %v919_v55 = vpack.c.bf16 %v916_v21, %v916_v21  ;;  %v924_v26 = vsel %vm399_vm3, %v918_v25, 0 }
 0x16b   : > { %846 = vmatprep.mubr.bf16.mxu0 %v1323_v29 }
 0x16c   : > { %1154 = vmatprep.subr.msk.bf16.mxu0 %vm399_vm3, %v804_v22 }
 0x16d   : > { %815 = vmatpush1.bf16.msra.mxu0 %v809_v37 }
 0x16e   : > { %1160 = vmatprep.subr.msk.bf16.mxu0 %vm399_vm3, %v919_v55 }
 0x170   : > { %1152 = vmatmul.mubr.msk.bf16.vlgmr.msra.gmra.mrb[8].mxu1 %vm395_vm4, %v1150_v24  ;;  %v976_v10 = vpop.permute.xlu1 %975 }
 0x171   : > { %871 = vmatpush1.bf16.msra.mxu1 %v865_v28  ;;  %1155 = vmatmul.mubr.msk.bf16.vlgmr.msra.gmra.mrb[12].mxu0 %vm395_vm4, %v1153_v27  ;;  %v1001_v28 = vld [vmem:[%s1698_s3] sm:$0xf] }
 0x172   : > { %930 = vmatpush1.bf16.msra.mxu0 %v924_v26  ;;  %902 = vmatprep.mubr.bf16.mxu1 %v1323_v29 }
 0x173   : > { %961 = vmatprep.mubr.bf16.mxu0 %v1323_v29 }
 0x178   : > { %1158 = vmatmul.mubr.msk.bf16.vlgmr.msra.gmra.mrb[12].mxu1 %vm395_vm4, %v1156_v30 }
 0x179   : > { %1161 = vmatmul.mubr.msk.bf16.vlgmr.msra.gmra.mrb[16].mxu0 %vm395_vm4, %v1159_v31 }
 0x1b2   : > { %v440_v32 = vpop.f32.mrb[0].mxu0 }
 0x1b3   : > { %v442_v33 = vpop.f32.mrb[1].mxu0 }
 0x1b4   : > { %v444_v34 = vpop.f32.mrb[2].mxu0 }
 0x1b5   : > { %v445_v35 = vpop.f32.mrb[3].mxu0 }
 0x233   : > { %v490_v36 = vpop.f32.mrb[0].mxu1 }
 0x234   : > { %v491_v38 = vadd.f32 %v490_v36, %v440_v32  ;;  %v492_v39 = vpop.f32.mrb[1].mxu1  ;;  %v547_v29 = vpop.f32.mrb[4].mxu0 }
 0x235   : > { %v493_v40 = vadd.f32 %v492_v39, %v442_v33  ;;  %v549_v41 = vpop.f32.mrb[5].mxu0  ;;  %v494_v42 = vpop.f32.mrb[2].mxu1  ;;  %v1009_v39 = vld [vmem:[%s1699_s4] sm:$0xf] }
 0x236   : > { %v554_v43 = vadd.f32 %v547_v29, %v491_v38  ;;  %v495_v44 = vpop.f32.mrb[3].mxu1  ;;  %v551_v45 = vpop.f32.mrb[6].mxu0 }
 0x237   : > { %v555_v46 = vadd.f32 %v549_v41, %v493_v40  ;;  %v552_v47 = vpop.f32.mrb[7].mxu0 }
 0x23b   : > { %v640_v48 = vpop.f32.mrb[4].mxu1 }
 0x23c   : > { %v647_v49 = vadd.f32 %v640_v48, %v554_v43  ;;  %v642_v50 = vpop.f32.mrb[5].mxu1  ;;  %v696_v51 = vpop.f32.mrb[8].mxu0 }
 0x23d   : > { %v648_v52 = vadd.f32 %v642_v50, %v555_v46  ;;  %v698_v53 = vpop.f32.mrb[9].mxu0  ;;  %v644_v54 = vpop.f32.mrb[6].mxu1 }
 0x23e   : > { %v703_v56 = vadd.f32 %v696_v51, %v647_v49  ;;  %v645_v57 = vpop.f32.mrb[7].mxu1  ;;  %v700_v58 = vpop.f32.mrb[10].mxu0  ;;  %v1020_v49 = vstv %s1017_s14 }
 0x23f   : > { %v704_v59 = vadd.f32 %v698_v53, %v648_v52  ;;  %v701_v60 = vpop.f32.mrb[11].mxu0  ;;  %v1028_v52 = vstv %s1162_s15 }
 0x243   : > { %v755_v61 = vpop.f32.mrb[8].mxu1 }
 0x244   : > { %v762_v62 = vadd.f32 %v755_v61, %v703_v56  ;;  %v757_v63 = vpop.f32.mrb[9].mxu1  ;;  %v848_v0 = vpop.f32.mrb[12].mxu0 }
 0x245   : > { %v763_v4 = vadd.f32 %v757_v63, %v704_v59  ;;  %v850_v1 = vpop.f32.mrb[13].mxu0  ;;  %v759_v5 = vpop.f32.mrb[10].mxu1 }
 0x246   : > { %v855_v6 = vadd.f32 %v848_v0, %v762_v62  ;;  %v760_v7 = vpop.f32.mrb[11].mxu1  ;;  %v852_v18 = vpop.f32.mrb[14].mxu0 }
 0x247   : > { %v856_v8 = vadd.f32 %v850_v1, %v763_v4  ;;  %v853_v9 = vpop.f32.mrb[15].mxu0 }
 0x24b   : > { %v904_v13 = vpop.f32.mrb[12].mxu1 }
 0x24c   : > { %v911_v11 = vadd.f32 %v904_v13, %v855_v6  ;;  %v906_v12 = vpop.f32.mrb[13].mxu1  ;;  %v963_v14 = vpop.f32.mrb[16].mxu0 }
 0x24d   : > { %v912_v15 = vadd.f32 %v906_v12, %v856_v8  ;;  %v965_v16 = vpop.f32.mrb[17].mxu0  ;;  %v908_v17 = vpop.f32.mrb[14].mxu1 }
 0x24e   : > { %v970_v19 = vadd.f32 %v963_v14, %v911_v11  ;;  %v909_v20 = vpop.f32.mrb[15].mxu1  ;;  %v967_v21 = vpop.f32.mrb[18].mxu0 }
 0x24f   : > { %v971_v22 = vadd.f32 %v965_v16, %v912_v15  ;;  %v968_v37 = vpop.f32.mrb[19].mxu0 }
 0x250   : > { %v978_v55 = vadd.f32 %v976_v10, %v970_v19 }
 0x251   : > { %v979_v23 = vadd.f32 %v976_v10, %v971_v22 }
 0x252   : > { %v981_v24 = vsel %vm980_vm10, %v978_v55, 0.0 }
 0x253   : > { %v982_v25 = vsel %vm980_vm10, %v979_v23, 0.0 }
 0x254   : > { %v983_v27 = vadd.f32 %v982_v25, %v981_v24 }
 0x256   : > { %984 = vadd.xlane.f32.xlu0 %v983_v27 }
 0x26c   : > { %1004 = vperm.xlu0 %1231, %v1001_v28  }
 0x2e3   : > { %v985_v26 = vpop.xlane.xlu0 %984 }
 0x2e4   : > { %v986_v30 = vmul.f32 0.00390625, %v985_v26 }
 0x2e6   : > { %v987_v31 = vsub.f32 %v978_v55, %v986_v30  ;;  %v988_v32 = vsub.f32 %v979_v23, %v986_v30 }
 0x2e8   : > { %v989_v33 = vmul.f32 %v987_v31, %v987_v31  ;;  %v990_v34 = vmul.f32 %v988_v32, %v988_v32 }
 0x2ea   : > { %v991_v35 = vsel %vm980_vm10, %v989_v33, 0.0  ;;  %v992_v36 = vsel %vm980_vm10, %v990_v34, 0.0 }
 0x2eb   : > { %v993_v38 = vadd.f32 %v992_v36, %v991_v35  ;;  %v1005_v43 = vpop.permute.xlu0 %1004 }
 0x2ed   : > { %994 = vadd.xlane.f32.xlu1 %v993_v38 }
 0x2fe   : > { %1012 = vperm.xlu1 %1230, %v1009_v39  }
 0x37a   : > { %v995_v29 = vpop.xlane.xlu1 %994 }
 0x37b   : > { %v996_v40 = vmul.f32 0.00390625, %v995_v29 }
 0x37d   : > { %v997_v41 = vadd.f32 1e-05, %v996_v40 }
 0x37e   : > { %v1013_v48 = vpop.permute.xlu1 %1012 }
 0x37f   : > { %1233 = vrsqrt.f32 %v997_v41 }
 0x389   : > { %v1234_v42 = vpop.eup %1233 }
 0x38a   : > { %v999_v44 = vmul.f32 %v1234_v42, %v987_v31  ;;  %v1000_v45 = vmul.f32 %v1234_v42, %v988_v32 }
 0x38c   : > { %v1007_v46 = vmul.f32 %v1005_v43, %v999_v44  ;;  %v1008_v47 = vmul.f32 %v1005_v43, %v1000_v45 }
 0x38e   : > { %v1015_v50 = vadd.f32 %v1013_v48, %v1007_v46  ;;  %v1016_v51 = vadd.f32 %v1013_v48, %v1008_v47 }
 0x390   : > { %vm1018_vm11 = vcmp.ge.f32.partialorder %v1015_v50, 0.0  ;;  %vm1019_vm12 = vcmp.ge.f32.partialorder %v1016_v51, 0.0  ;;  %v1021_v53 = vmul.f32 %v1020_v49, %v1015_v50  ;;  %v1022_v54 = vmul.f32 %v1020_v49, %v1016_v51 }
 0x392   : > { %v1023_v56 = vsel %vm1018_vm11, %v1015_v50, %v1021_v53  ;;  %v1024_v57 = vsel %vm1019_vm12, %v1016_v51, %v1022_v54 }
 0x393   : > { %vm1026_vm13 = vcmp.ge.f32.partialorder %v1023_v56, 0.0  ;;  %vm1027_vm14 = vcmp.ge.f32.partialorder %v1024_v57, 0.0  ;;  %v1029_v58 = vmul.f32 %v1028_v52, %v1023_v56  ;;  %v1030_v59 = vmul.f32 %v1028_v52, %v1024_v57 }
 0x395   : > { %v1031_v60 = vsel %vm1026_vm13, %v1023_v56, %v1029_v58  ;;  %v1032_v61 = vsel %vm1027_vm14, %v1024_v57, %v1030_v59 }
 0x396   : > { %v1033_v62 = vadd.f32 %v1031_v60, %v1441_v2  ;;  %v1034_v63 = vadd.f32 %v1032_v61, %v1445_v3 }
 0x398   : > { %v1037_v0 = vcombine.low %v1033_v62, %v1034_v63 }
 0x39a   : > { %1039 = vst [vmem:[%s285_s19] sm:$0xff] %v1037_v0 }
 0x39b   : > { %1263 = shalt.err (!%p1260_p2)
}
 0x39c   : > { %s1264_s14 = scalar_lea.hbm %s1653_s23, 128  ;;  %s1268_s17 = scalar_lea.hbm %s1702_s7, 256 }
 0x39d   : > { %p1265_p3 = scmp.ne.s32.totalorder %s1653_s23, %s1264_s14  ;;  %p1269_p8 = scmp.lt.u32.totalorder %s1653_s23, %s1702_s7 }
 0x39e   : > { %p1270_p11 = scmp.lt.u32.totalorder %s1268_s17, %s1264_s14  ;;  %p1272_p10 = scmp.lt.u32.totalorder %s1264_s14, %s1653_s23 }
 0x39f   : > { %p1266_p4 = pnand %p1265_p3, %p1404_p5 }
 0x3a0   : > { %p1271_p9 = por %p1270_p11, %p1269_p8 }
 0x3a1   : > { %p1267_p7 = pneg %p1266_p4 }
 0x3a2   : > { %p1273_p12 = por %p1272_p10, %p1271_p9 }
 0x3a4   : > { %p1274_p13 = pnand %p1273_p12, %p1267_p7 }
 0x3a6   : > { %1277 = shalt.err (!%p1274_p13)
}
 0x3a7   : > { %1178 = dma.vmem_to_hbm [thread:$0]  (%p1404_p5), %s1655_s20, 128, %s1653_s23, %s1041_s29  }
 0x3a8 PF: > { %p1190_p0 = scmp.ge.s32.totalorder %s1316_s27, 2  ;;  %s1067_s21 = sand.u32 1, %s1304_s24  }
 0x3a9   : > { %s1068_s22 = scalar_lea.sflag [#allocation3], %s1067_s21 }
 0x3aa   : > { %p1185_p1 = pnand %p1190_p0, %p1408_p6 }
 0x3ac   : > { %1299 = dma.done.wait (!%p1185_p1), %s1068_s22, 128  }
 0x3ad   : > { %1301 = vsyncadd (!%p1185_p1), %s1068_s22, 4294967168  ;;  %p18_p2 = scmp.ge.s32.totalorder %s1391_s30, 4   ;;  %s1706_s24 = smov %s1308_s25 }
 0x3ae   : > { %s1707_s25 = smov %s1312_s26  ;;  %s1708_s26 = smov %s1402_s10 }
 0x3af   : > { %s1709_s27 = smov %s1391_s30  ;;  %20 = sbr.rel (!%p18_p2) target bundleno = 4 (0x4), region = 96 }
 0x3b6   :  { %1073 = vsyncpa [#allocation3], 1 }
 0x3b7   :  { %1075 = vsyncpa [#allocation3 + $0x1], 1 }
 0x3b8   :  { %1076 = vsyncpa [#allocation4], 1 }
 0x3b9   :  { %1078 = vsyncpa [#allocation4 + $0x1], 1 }

</bundles_post_ra>
